<compile_context>
chip_gen: v5e
topology: v5e:2x2
jax: 0.10.0
libtpu: 0.0.40
codegen_flags: <defaults>
</compile_context>

<pallas_src>
import functools
import math

import jax
import jax.numpy as jnp
from jax import lax
from jax.experimental import pallas as pl
from jax.experimental.pallas import tpu as pltpu


# ----------------------------- helpers ---------------------------------------

def _erf(x):
    # Abramowitz & Stegun 7.1.26 rational approximation, |err| <= 1.5e-7 (f32-accurate).
    a1, a2, a3, a4, a5 = 0.254829592, -0.284496736, 1.421413741, -1.453152027, 1.061405429
    p = 0.3275911
    s = jnp.where(x < 0.0, -1.0, 1.0)
    z = jnp.abs(x)
    t = 1.0 / (1.0 + p * z)
    poly = ((((a5 * t + a4) * t + a3) * t + a2) * t + a1) * t
    return s * (1.0 - poly * jnp.exp(-z * z))


def _gelu(x):
    return 0.5 * x * (1.0 + _erf(x * 0.7071067811865476))


def _pick_tile_s(S):
    """Largest lane-aligned tile (multiple of 128) that divides S, else the full extent."""
    for t in (2048, 1024, 512, 256, 128):
        if S >= t and S % t == 0:
            return t
    return S


# ----------------------------- Pallas kernels -------------------------------

def _dwconv_norm_kernel(w_ref, b_ref, g_ref, bt_ref, x_ref, o_ref, pad_ref, *, fuse_norm):
    """Depthwise 7x7x7 'same' conv (+bias), optionally fused with per-channel GroupNorm.

    w_ref:  SMEM (C*343,) flattened per-channel taps
    b_ref/g_ref/bt_ref: SMEM (C,) conv bias / GroupNorm gamma / beta
    x_ref:  VMEM (1, 1, D, H, W) input block for one (n, c)
    o_ref:  VMEM (1, 1, D, H, W) output block
    pad_ref: VMEM scratch (D+6, H+6, W+6) - halo padding built in VMEM, not via jnp.pad.
    """
    c = pl.program_id(1)
    D, H, W = x_ref.shape[2], x_ref.shape[3], x_ref.shape[4]

    pad_ref[...] = jnp.zeros_like(pad_ref)
    pad_ref[3:3 + D, 3:3 + H, 3:3 + W] = x_ref[0, 0].astype(pad_ref.dtype)

    base = c * 343

    def kd_body(kd, acc):
        for kh in range(7):          # 49 static taps per kd step (LLO-visible)
            for kw in range(7):
                tap = pad_ref[pl.ds(kd, D), kh:kh + H, kw:kw + W]
                acc = acc + tap * w_ref[base + kd * 49 + kh * 7 + kw]
        return acc

    acc = lax.fori_loop(0, 7, kd_body, jnp.zeros((D, H, W), jnp.float32))
    acc = acc + b_ref[c]

    if fuse_norm:
        n_el = D * H * W
        mean = jnp.sum(acc, keepdims=True) / n_el
        var = jnp.sum(jnp.square(acc - mean), keepdims=True) / n_el
        acc = (acc - mean) * lax.rsqrt(var + 1e-5) * g_ref[c] + bt_ref[c]

    o_ref[0, 0] = acc.astype(o_ref.dtype)


def _chan_norm_kernel(g_ref, b_ref, x_ref, o_ref):
    """Standalone GroupNorm(groups=C) -- only used after stride-2 subsampling."""
    c = pl.program_id(1)
    x = x_ref[0, 0].astype(jnp.float32)
    n_el = x.shape[0] * x.shape[1] * x.shape[2]
    mean = jnp.sum(x, keepdims=True) / n_el
    var = jnp.sum(jnp.square(x - mean), keepdims=True) / n_el
    o_ref[0, 0] = ((x - mean) * lax.rsqrt(var + 1e-5) * g_ref[c] + b_ref[c]).astype(o_ref.dtype)


def _mlp_kernel(x_ref, w2_ref, b2_ref, w3_ref, b3_ref, o_ref):
    """Fused conv2 (1x1x1) + GELU + conv3 (1x1x1) on a spatial column tile.

    x_ref: (1, Cin, TS); w2_ref: (Chid, Cin); w3_ref: (Cout, Chid); biases column vectors.
    The expanded (Chid, TS) activation never leaves VMEM.
    """
    h = jnp.dot(w2_ref[...], x_ref[0], preferred_element_type=jnp.float32) + b2_ref[...]
    h = _gelu(h)
    y = jnp.dot(w3_ref[...], h, preferred_element_type=jnp.float32) + b3_ref[...]
    o_ref[0] = y.astype(o_ref.dtype)


def _pw_kernel(x_ref, w_ref, b_ref, o_ref):
    """Single 1x1x1 conv (semm / final output conv): (Cout, Cin) @ (Cin, TS) + bias."""
    y = jnp.dot(w_ref[...], x_ref[0], preferred_element_type=jnp.float32) + b_ref[...]
    o_ref[0] = y.astype(o_ref.dtype)


# ------------------------------ Pallas wrappers ------------------------------

@functools.partial(jax.jit, static_argnames=("fuse_norm",))
def dwconv7(x, w_flat, b, gamma, beta, *, fuse_norm=True):
    """Depthwise 7^3 'same' conv (+bias) [+ fused GroupNorm].  x: (N, C, D, H, W)."""
    N, C, D, H, W = x.shape
    kernel = functools.partial(_dwconv_norm_kernel, fuse_norm=fuse_norm)
    return pl.pallas_call(
        kernel,
        out_shape=jax.ShapeDtypeStruct((N, C, D, H, W), x.dtype),
        grid=(N, C),
        in_specs=[
            pl.BlockSpec(memory_space=pltpu.MemorySpace.SMEM),   # w_flat (C*343,)
            pl.BlockSpec(memory_space=pltpu.MemorySpace.SMEM),   # bias (C,)
            pl.BlockSpec(memory_space=pltpu.MemorySpace.SMEM),   # gamma (C,)
            pl.BlockSpec(memory_space=pltpu.MemorySpace.SMEM),   # beta (C,)
            pl.BlockSpec((1, 1, D, H, W), lambda n, c: (n, c, 0, 0, 0)),
        ],
        out_specs=pl.BlockSpec((1, 1, D, H, W), lambda n, c: (n, c, 0, 0, 0)),
        scratch_shapes=[pltpu.VMEM((D + 6, H + 6, W + 6), jnp.float32)],
        compiler_params=pltpu.CompilerParams(
            dimension_semantics=("parallel", "parallel"),
            vmem_limit_bytes=32 * 1024 * 1024),
    )(w_flat, b, gamma, beta, x)


@jax.jit
def channel_norm(x, gamma, beta):
    N, C, D, H, W = x.shape
    return pl.pallas_call(
        _chan_norm_kernel,
        out_shape=jax.ShapeDtypeStruct(x.shape, x.dtype),
        grid=(N, C),
        in_specs=[
            pl.BlockSpec(memory_space=pltpu.MemorySpace.SMEM),
            pl.BlockSpec(memory_space=pltpu.MemorySpace.SMEM),
            pl.BlockSpec((1, 1, D, H, W), lambda n, c: (n, c, 0, 0, 0)),
        ],
        out_specs=pl.BlockSpec((1, 1, D, H, W), lambda n, c: (n, c, 0, 0, 0)),
        compiler_params=pltpu.CompilerParams(
            dimension_semantics=("parallel", "parallel"),
            vmem_limit_bytes=32 * 1024 * 1024),
    )(gamma, beta, x)


@jax.jit
def mlp_conv(x, w2T, b2, w3T, b3):
    """Fused conv2 + GELU + conv3.  x: (N, Cin, D, H, W); w2T: (Chid, Cin); w3T: (Cout, Chid)."""
    N, Cin, D, H, W = x.shape
    Chid, Cout = w2T.shape[0], w3T.shape[0]
    S = D * H * W
    ts = _pick_tile_s(S)
    x3 = x.reshape(N, Cin, S)
    y3 = pl.pallas_call(
        _mlp_kernel,
        out_shape=jax.ShapeDtypeStruct((N, Cout, S), x.dtype),
        grid=(N, S // ts),
        in_specs=[
            pl.BlockSpec((1, Cin, ts), lambda n, j: (n, 0, j)),
            pl.BlockSpec((Chid, Cin), lambda n, j: (0, 0)),
            pl.BlockSpec((Chid, 1), lambda n, j: (0, 0)),
            pl.BlockSpec((Cout, Chid), lambda n, j: (0, 0)),
            pl.BlockSpec((Cout, 1), lambda n, j: (0, 0)),
        ],
        out_specs=pl.BlockSpec((1, Cout, ts), lambda n, j: (n, 0, j)),
        compiler_params=pltpu.CompilerParams(
            dimension_semantics=("parallel", "parallel"),
            vmem_limit_bytes=32 * 1024 * 1024),
    )(x3, w2T, b2.reshape(Chid, 1), w3T, b3.reshape(Cout, 1))
    return y3.reshape(N, Cout, D, H, W)


@jax.jit
def pointwise_conv(x, wT, b):
    """Single 1x1x1 conv.  x: (N, Cin, D, H, W); wT: (Cout, Cin)."""
    N, Cin, D, H, W = x.shape
    Cout = wT.shape[0]
    S = D * H * W
    ts = _pick_tile_s(S)
    x3 = x.reshape(N, Cin, S)
    y3 = pl.pallas_call(
        _pw_kernel,
        out_shape=jax.ShapeDtypeStruct((N, Cout, S), x.dtype),
        grid=(N, S // ts),
        in_specs=[
            pl.BlockSpec((1, Cin, ts), lambda n, j: (n, 0, j)),
            pl.BlockSpec((Cout, Cin), lambda n, j: (0, 0)),
            pl.BlockSpec((Cout, 1), lambda n, j: (0, 0)),
        ],
        out_specs=pl.BlockSpec((1, Cout, ts), lambda n, j: (n, 0, j)),
        compiler_params=pltpu.CompilerParams(
            dimension_semantics=("parallel", "parallel"),
            vmem_limit_bytes=32 * 1024 * 1024),
    )(x3, wT, b.reshape(Cout, 1))
    return y3.reshape(N, Cout, D, H, W)


# ------------------------------ MedNeXt blocks -------------------------------

def mednext_block(x, p, *, stride=1, transposed=False):
    """Shared body of MedNeXtBloc / DownSampling / UpSampling blocks (NCDHW)."""
    if transposed:
        # ConvTranspose3d(k=7, s=2, p=3) == zero-dilate input, pad 3, correlate with the
        # spatially flipped kernel (flip folded into the stored taps).
        # TODO(synk): direct 8-phase polyphase depthwise transposed conv (<=4^3 taps/phase)
        #             to skip the ~87% zero multiplies and the dilated-volume allocation.
        N, C, D, H, W = x.shape
        xd = jnp.zeros((N, C, 2 * D - 1, 2 * H - 1, 2 * W - 1), x.dtype)
        x_in = xd.at[:, :, ::2, ::2, ::2].set(x)
    else:
        x_in = x

    if stride == 2:
        # Stride-2 conv == stride-1 conv + even-subsample; GroupNorm must see the
        # subsampled volume (PyTorch order: stride-2 conv -> norm), so norm stays unfused.
        # TODO(synk): fold the stride-2 subsample into the dwconv kernel (polyphase taps).
        y = dwconv7(x_in, p["w1"], p["b1"], p["gamma"], p["beta"], fuse_norm=False)
        y = y[:, :, ::2, ::2, ::2]
        y = channel_norm(y, p["gamma"], p["beta"])
    else:
        y = dwconv7(x_in, p["w1"], p["b1"], p["gamma"], p["beta"], fuse_norm=True)

    y = mlp_conv(y, p["w2T"], p["b2"], p["w3T"], p["b3"])   # conv2 + GELU + conv3 (fused)

    if transposed:
        y = jnp.pad(y, ((0, 0), (0, 0), (1, 0), (1, 0), (1, 0)))   # F.pad(1,0,1,0,1,0)
    return y


def mednext_forward(P, x):
    x1 = pointwise_conv(x, P["semm_wT"], P["semm_b"])
    x2 = x1
    for bp in P["med1"]:
        x2 = mednext_block(x2, bp)
    x3 = mednext_block(x2, P["down"][0], stride=2)
    x4 = x3
    for bp in P["med2"]:
        x4 = mednext_block(x4, bp)
    x5 = mednext_block(x4, P["down"][1], stride=2)
    x6 = x5
    for bp in P["med3"]:
        x6 = mednext_block(x6, bp)
    x7 = mednext_block(x6, P["down"][2], stride=2)
    x8 = x7
    for bp in P["med4"]:
        x8 = mednext_block(x8, bp)
    x9 = mednext_block(x8, P["down"][3], stride=2)
    x10 = x9
    for bp in P["med5"]:
        x10 = mednext_block(x10, bp)
    x11 = mednext_block(x10, P["up"][0], transposed=True)
    x12 = x11 + x8
    for bp in P["med6"]:
        x12 = mednext_block(x12, bp)
    x13 = mednext_block(x12, P["up"][1], transposed=True)
    x14 = x13 + x6
    for bp in P["med7"]:
        x14 = mednext_block(x14, bp)
    x15 = mednext_block(x14, P["up"][2], transposed=True)
    x16 = x15 + x4
    for bp in P["med8"]:
        x16 = mednext_block(x16, bp)
    x17 = mednext_block(x16, P["up"][3], transposed=True)
    x18 = x17 + x2
    for bp in P["med9"]:
        x18 = mednext_block(x18, bp)
    # final ConvTranspose3d(oc, 4, 1) == pointwise conv
    x19 = pointwise_conv(x18, P["out_wT"], P["out_b"])
    return x19


# ---------------------------- parameter creation -----------------------------

def _init_block(key, cin, c3_out, exp_r, transposed=False):
    ks = jax.random.split(key, 6)
    chid = exp_r * cin
    w1 = jax.random.normal(ks[0], (cin, 7, 7, 7), jnp.float32) / math.sqrt(343.0)
    if transposed:
        w1 = w1[:, ::-1, ::-1, ::-1]  # ConvTranspose correlates with the flipped kernel
    return {
        "w1": w1.reshape(cin * 343),                       # flat taps -> 1-D SMEM
        "b1": jax.random.normal(ks[1], (cin,), jnp.float32) * 0.02,
        "gamma": jnp.ones((cin,), jnp.float32),            # GroupNorm affine defaults
        "beta": jnp.zeros((cin,), jnp.float32),
        "w2T": jax.random.normal(ks[2], (chid, cin), jnp.float32) / math.sqrt(cin),
        "b2": jax.random.normal(ks[3], (chid,), jnp.float32) * 0.02,
        "w3T": jax.random.normal(ks[4], (c3_out, chid), jnp.float32) / math.sqrt(chid),
        "b3": jax.random.normal(ks[5], (c3_out,), jnp.float32) * 0.02,
    }


def init_mednext_params(key, in_channels, oc, exp_rate, num_blocks):
    n_keys = sum(num_blocks) + 4 + 4 + 4
    it = iter(jax.random.split(key, n_keys))
    P = {}
    P["semm_wT"] = jax.random.normal(next(it), (oc, in_channels), jnp.float32) / math.sqrt(in_channels)
    P["semm_b"] = jax.random.normal(next(it), (oc,), jnp.float32) * 0.02
    enc_ch = [oc, 2 * oc, 4 * oc, 8 * oc, 16 * oc]
    for i in range(5):  # med_1 .. med_5
        P[f"med{i + 1}"] = [
            _init_block(next(it), enc_ch[i], enc_ch[i], exp_rate[i])
            for _ in range(num_blocks[i])
        ]
    P["down"] = [
        _init_block(next(it), enc_ch[i], enc_ch[i + 1], exp_rate[i + 1]) for i in range(4)
    ]
    dec_ch = [8 * oc, 4 * oc, 2 * oc, oc]
    for j in range(4):  # med_6 .. med_9
        P[f"med{j + 6}"] = [
            _init_block(next(it), dec_ch[j], dec_ch[j], exp_rate[5 + j])
            for _ in range(num_blocks[5 + j])
        ]
    up_in = [16 * oc, 8 * oc, 4 * oc, 2 * oc]
    up_exp = [exp_rate[4], exp_rate[5], exp_rate[6], exp_rate[7]]
    P["up"] = [
        _init_block(next(it), up_in[j], up_in[j] // 2, up_exp[j], transposed=True)
        for j in range(4)
    ]
    P["out_wT"] = jax.random.normal(next(it), (4, oc), jnp.float32) / math.sqrt(oc)
    P["out_b"] = jax.random.normal(next(it), (4,), jnp.float32) * 0.02
    return P


# ----------------------------------- main ------------------------------------

if __name__ == "__main__":
    key = jax.random.PRNGKey(0)
    kp, kx = jax.random.split(key)

    N, in_channels, base_out, S = 1, 2, 2, 16   # spatial 16 -> 4 down/up-sample stages
    exp_rate = [2, 3, 4, 4, 4, 4, 4, 3, 2]
    num_blocks = [2, 2, 2, 2, 2, 2, 2, 2, 2]

    params = init_mednext_params(kp, in_channels, base_out, exp_rate, num_blocks)
    x = jax.random.normal(kx, (N, in_channels, S, S, S), jnp.float32)

    y = jax.jit(mednext_forward)(params, x)
    y = jax.block_until_ready(y)

    assert y.shape == (N, 4, S, S, S), y.shape
    assert bool(jnp.all(jnp.isfinite(y)))
    print("KERNEL_OK")
</pallas_src>

<mosaic_0001>
module attributes {stable_mosaic.version = 11 : i64} {
  func.func @_pw_kernel(%arg0: i32, %arg1: i32, %arg2: memref<1x2x2048xf32, #tpu.memory_space<vmem>>, %arg3: memref<2x2xf32, #tpu.memory_space<vmem>>, %arg4: memref<2x1xf32, #tpu.memory_space<vmem>>, %arg5: memref<1x2x2048xf32, #tpu.memory_space<vmem>>) attributes {dimension_semantics = [#tpu.dimension_semantics<parallel>, #tpu.dimension_semantics<parallel>], iteration_bounds = array<i64: 1, 2>, scalar_prefetch = 0 : i64, scratch_operands = 0 : i64, tpu.core_type = #tpu.core_type<tc>, window_params = [{transform_indices = @transform_0, window_bounds = array<i64: 1, 2, 2048>}, {pipeline_mode = #tpu.pipeline_mode<synchronous>, transform_indices = @transform_1, window_bounds = array<i64: 2, 2>}, {pipeline_mode = #tpu.pipeline_mode<synchronous>, transform_indices = @transform_2, window_bounds = array<i64: 2, 1>}, {transform_indices = @transform_3, window_bounds = array<i64: 1, 2, 2048>}]} {
    %c0 = arith.constant 0 : index
    %c0_0 = arith.constant 0 : index
    %0 = vector.load %arg3[%c0, %c0_0] : memref<2x2xf32, #tpu.memory_space<vmem>>, vector<2x2xf32>
    %c0_1 = arith.constant 0 : index
    %c0_2 = arith.constant 0 : index
    %c0_3 = arith.constant 0 : index
    %1 = vector.load %arg2[%c0_1, %c0_2, %c0_3] : memref<1x2x2048xf32, #tpu.memory_space<vmem>>, vector<1x2x2048xf32>
    %2 = vector.shape_cast %1 : vector<1x2x2048xf32> to vector<2x2048xf32>
    %cst = arith.constant dense<0.000000e+00> : vector<2x2048xf32>
    %3 = tpu.matmul %0, %2, %cst {dimension_numbers = #tpu.dot_dimension_numbers<[1], [0], [0], [1], [0, 0, 1, 1], [], []>} : vector<2x2xf32>, vector<2x2048xf32>, vector<2x2048xf32> -> vector<2x2048xf32>
    %c0_4 = arith.constant 0 : index
    %c0_5 = arith.constant 0 : index
    %4 = vector.load %arg4[%c0_4, %c0_5] : memref<2x1xf32, #tpu.memory_space<vmem>>, vector<2x1xf32>
    %5 = vector.broadcast %4 : vector<2x1xf32> to vector<2x2048xf32>
    %6 = arith.addf %3, %5 : vector<2x2048xf32>
    %c0_6 = arith.constant 0 : index
    %c0_7 = arith.constant 0 : index
    %c0_8 = arith.constant 0 : index
    %7 = vector.load %arg5[%c0_6, %c0_7, %c0_8] : memref<1x2x2048xf32, #tpu.memory_space<vmem>>, vector<1x2x2048xf32>
    %8 = vector.shape_cast %7 : vector<1x2x2048xf32> to vector<2x2048xf32>
    %9 = vector.shape_cast %6 : vector<2x2048xf32> to vector<1x2x2048xf32>
    tpu.vector_store %arg5[%c0_6, %c0_7, %c0_8], %9 {strides = array<i32>} : memref<1x2x2048xf32, #tpu.memory_space<vmem>>, vector<1x2x2048xf32>,
    return
  }
  func.func @transform_0(%arg0: i32, %arg1: i32) -> (i32, i32, i32) {
    %c0_i32 = arith.constant 0 : i32
    %c0_i32_0 = arith.constant 0 : i32
    return %arg0, %c0_i32, %arg1 : i32, i32, i32
  }
  func.func @transform_1(%arg0: i32, %arg1: i32) -> (i32, i32) {
    %c0_i32 = arith.constant 0 : i32
    %c0_i32_0 = arith.constant 0 : i32
    %c0_i32_1 = arith.constant 0 : i32
    return %c0_i32, %c0_i32_0 : i32, i32
  }
  func.func @transform_2(%arg0: i32, %arg1: i32) -> (i32, i32) {
    %c0_i32 = arith.constant 0 : i32
    %c0_i32_0 = arith.constant 0 : i32
    %c0_i32_1 = arith.constant 0 : i32
    return %c0_i32, %c0_i32_0 : i32, i32
  }
  func.func @transform_3(%arg0: i32, %arg1: i32) -> (i32, i32, i32) {
    %c0_i32 = arith.constant 0 : i32
    %c0_i32_0 = arith.constant 0 : i32
    return %arg0, %c0_i32, %arg1 : i32, i32, i32
  }
}

</mosaic_0001>

<bundles_post_ra>
// kernel: pointwise_conv.1
= control target key start
LH: loop header
LB: loop body
LE: loop exit
PB: predicated region body
PF: predicated region fallthrough
CT: control target
= control target key end

     0   :  { %s854_s12 = smov 0   ;;  %s856_s13 = smov 0   ;;  %s950_s0 = inlined_call_operand.vmem [shape: f32[1,2,4096], index: 0, kind: input, shape index: {}]   ;;  %s951_s1 = inlined_call_operand.vmem [shape: f32[2,2], index: 1, kind: input, shape index: {}]   ;;  %s952_s2 = inlined_call_operand.vmem [shape: f32[2,1], index: 2, kind: input, shape index: {}]   ;;  %s953_s3 = inlined_call_operand.vmem [shape: f32[1,2,4096], index: 3, kind: output, shape index: {}]  }
   0x1   :  { %s858_s14 = smov 0  }
   0x2 LB: > { %s22_s15 = sadd.s32 1, %s827_s13  ;;  %p744_p0 = scmp.ge.s32.totalorder %s831_s14, 1  ;;  %s831_s14 = sphi %s858_s14, %s13_s14   ;;  %s827_s13 = sphi %s856_s13, %s955_s13   ;;  %s823_s12 = sphi %s854_s12, %s954_s12  }
   0x3   : > { %p23_p1 = scmp.ge.s32.totalorder %s22_s15, 2  ;;  %p158_p2 = scmp.lt.s32.totalorder %s831_s14, 3 }
   0x5   : > { %s957_s15 = smov (%p23_p1, %s22_s15), 0  ;;  %p159_p3 = pnand %p744_p0, %p158_p2 }
   0x6   : > { %s745_s16 = sshll.u32 (!%p159_p3), %s823_s12, 4 }
   0x7   : > { %162 = sbr.rel (%p159_p3) target bundleno = 188 (0xbc), region = 32  ;;  %p193_p4 = scmp.lt.s32.totalorder (!%p159_p3), %s745_s16, 31 }
   0xc   : > { %v833_v0 = vmov 0   ;;  %v215_v1 = vld [vmem:[%s952_s2] sm:$0x3]  ;;  %s959_s16 = smov (!%p193_p4, %s745_s16), 31  ;;  %vm250_vm0 = vcmask 1041408   ;;  %vm246_vm1 = vcmask 15360  }
   0xd   : > { %808 = vset.pattern.permute.xlu0 %v833_v0  ;;  %s746_s19 = sshll.u32 %s959_s16, 1  ;;  %v210_v4 = vld [vmem:[%s951_s1] sm:$0x3]  ;;  %vm632_vm2 = vcmask 1045508   ;;  %vm634_vm3 = vcmask 1043456  }
   0xe   : > { %218 = vperm.xlu0 %808, %v215_v1   ;;  %s198_s22 = scalar_lea.vmem %s950_s0, %s746_s19  ;;  %s924_s27 = scalar_lea.vmem %s953_s3, %s746_s19 }
   0xf   : > { %v211_v2 = vld [vmem:[%s198_s22] sm:$0xff]  ;;  %v212_v3 = vld [vmem:[%s198_s22 + $0x8] sm:$0xff]  ;;  %v213_v5 = vld [vmem:[%s198_s22 + $0x10] sm:$0xff] }
  0x10   : > { %225 = vst [vmem:[#allocation1] ss:$4 sm:$0xff] %v211_v2  ;;  %v214_v8 = vld [vmem:[%s198_s22 + $0x18] sm:$0xff] }
  0x11   : > { %227 = vst [vmem:[#allocation1 + $0x20] ss:$4 sm:$0xff] %v212_v3 }
  0x17   : > { %v230_v6 = vld.sshfl [vmem:[#allocation1 + $0x10] sm:$0xff pattern:$0x73625140]  ;;  %v231_v7 = vld.sshfl [vmem:[#allocation1 + $0x18] sm:$0xff pattern:$0x73625140] }
  0x18   : > { %753 = vmatpush.msk.msra.mxu2 %vm250_vm0, %v230_v6  ;;  %755 = vmatpush.msk.msra.mxu3 %vm250_vm0, %v231_v7  ;;  %v234_v9 = vld.sshfl [vmem:[#allocation1 + $0x30] sm:$0xff pattern:$0x73625140]  ;;  %v235_v10 = vld.sshfl [vmem:[#allocation1 + $0x38] sm:$0xff pattern:$0x73625140] }
  0x19   : > { %754 = vmatmul.msk.f32.vlgmr.msra.gmra.mxu2 %vm246_vm1, %v210_v4  ;;  %756 = vmatmul.msk.f32.vlgmr.msra.gmra.mxu3 %vm246_vm1, %v210_v4  ;;  %v229_v11 = vld.sshfl [vmem:[#allocation1 + $0x8] sm:$0xff pattern:$0x73625140]  ;;  %v228_v12 = vld.sshfl [vmem:[#allocation1] sm:$0xff pattern:$0x73625140] }
  0x1a   : > { %761 = vmatpush.msk.msrb.mxu2 %vm250_vm0, %v234_v9  ;;  %763 = vmatpush.msk.msrb.mxu3 %vm250_vm0, %v235_v10  ;;  %236 = vst [vmem:[#allocation1] ss:$4 sm:$0xff] %v213_v5  ;;  %v233_v13 = vld.sshfl [vmem:[#allocation1 + $0x28] sm:$0xff pattern:$0x73625140] }
  0x1b   : > { %751 = vmatpush.msk.msra.mxu1 %vm250_vm0, %v229_v11  ;;  %749 = vmatpush.msk.msra.mxu0 %vm250_vm0, %v228_v12  ;;  %v232_v14 = vld.sshfl [vmem:[#allocation1 + $0x20] sm:$0xff pattern:$0x73625140] }
  0x1c   : > { %752 = vmatmul.msk.f32.vlgmr.msra.gmra.mxu1 %vm246_vm1, %v210_v4  ;;  %750 = vmatmul.msk.f32.vlgmr.msra.gmra.mxu0 %vm246_vm1, %v210_v4  ;;  %237 = vst [vmem:[#allocation1 + $0x20] ss:$4 sm:$0xff] %v214_v8 }
  0x1d   : > { %759 = vmatpush.msk.msrb.mxu1 %vm250_vm0, %v233_v13  ;;  %757 = vmatpush.msk.msrb.mxu0 %vm250_vm0, %v232_v14 }
  0x21   : > { %762 = vmatmul.msk.f32.vlgmr.msrb.gmra.mxu2 %vm246_vm1, %v210_v4  ;;  %764 = vmatmul.msk.f32.vlgmr.msrb.gmra.mxu3 %vm246_vm1, %v210_v4  ;;  %v240_v15 = vld.sshfl [vmem:[#allocation1 + $0x10] sm:$0xff pattern:$0x73625140]  ;;  %v241_v16 = vld.sshfl [vmem:[#allocation1 + $0x18] sm:$0xff pattern:$0x73625140] }
  0x22   : > { %769 = vmatpush.msk.msra.mxu2 %vm250_vm0, %v240_v15  ;;  %771 = vmatpush.msk.msra.mxu3 %vm250_vm0, %v241_v16  ;;  %v239_v17 = vld.sshfl [vmem:[#allocation1 + $0x8] sm:$0xff pattern:$0x73625140]  ;;  %v238_v18 = vld.sshfl [vmem:[#allocation1] sm:$0xff pattern:$0x73625140] }
  0x23   : > { %767 = vmatpush.msk.msra.mxu1 %vm250_vm0, %v239_v17  ;;  %765 = vmatpush.msk.msra.mxu0 %vm250_vm0, %v238_v18  ;;  %v244_v19 = vld.sshfl [vmem:[#allocation1 + $0x30] sm:$0xff pattern:$0x73625140]  ;;  %v245_v20 = vld.sshfl [vmem:[#allocation1 + $0x38] sm:$0xff pattern:$0x73625140] }
  0x24   : > { %760 = vmatmul.msk.f32.vlgmr.msrb.gmra.mxu1 %vm246_vm1, %v210_v4  ;;  %758 = vmatmul.msk.f32.vlgmr.msrb.gmra.mxu0 %vm246_vm1, %v210_v4  ;;  %v243_v21 = vld.sshfl [vmem:[#allocation1 + $0x28] sm:$0xff pattern:$0x73625140]  ;;  %v242_v22 = vld.sshfl [vmem:[#allocation1 + $0x20] sm:$0xff pattern:$0x73625140] }
  0x25   : > { %777 = vmatpush.msk.msrb.mxu2 %vm250_vm0, %v244_v19  ;;  %779 = vmatpush.msk.msrb.mxu3 %vm250_vm0, %v245_v20 }
  0x26   : > { %775 = vmatpush.msk.msrb.mxu1 %vm250_vm0, %v243_v21  ;;  %773 = vmatpush.msk.msrb.mxu0 %vm250_vm0, %v242_v22 }
  0x29   : > { %770 = vmatmul.msk.f32.vlgmr.msra.gmra.mxu2 %vm246_vm1, %v210_v4  ;;  %772 = vmatmul.msk.f32.vlgmr.msra.gmra.mxu3 %vm246_vm1, %v210_v4 }
  0x2c   : > { %768 = vmatmul.msk.f32.vlgmr.msra.gmra.mxu1 %vm246_vm1, %v210_v4  ;;  %766 = vmatmul.msk.f32.vlgmr.msra.gmra.mxu0 %vm246_vm1, %v210_v4 }
  0x31   : > { %778 = vmatmul.msk.f32.vlgmr.msrb.gmra.mxu2 %vm246_vm1, %v210_v4  ;;  %780 = vmatmul.msk.f32.vlgmr.msrb.gmra.mxu3 %vm246_vm1, %v210_v4 }
  0x34   : > { %776 = vmatmul.msk.f32.vlgmr.msrb.gmra.mxu1 %vm246_vm1, %v210_v4  ;;  %774 = vmatmul.msk.f32.vlgmr.msrb.gmra.mxu0 %vm246_vm1, %v210_v4 }
  0x80   : > { %v219_v23 = vpop.permute.xlu0 %218 }
  0x99   : > { %v320_v24 = vpop.f32.mrf.mxu1  ;;  %v300_v25 = vpop.f32.mrf.mxu0 }
  0x9a   : > { %v321_v26 = vadd.f32 %v320_v24, %v219_v23  ;;  %v301_v27 = vadd.f32 %v300_v25, %v219_v23 }
  0x9c   : > { %v619_v28 = vrot.slane %v321_v26, 6  ;;  %v340_v29 = vpop.f32.mrf.mxu2  ;;  %v360_v30 = vpop.f32.mrf.mxu3 }
  0x9d   : > { %v341_v31 = vadd.f32 %v340_v29, %v219_v23  ;;  %v361_v32 = vadd.f32 %v360_v30, %v219_v23 }
  0x9e   : > { %v631_v33 = vsel %vm250_vm0, %v301_v27, %v619_v28 }
  0x9f   : > { %v620_v34 = vrot.slane %v341_v31, 4  ;;  %v621_v35 = vrot.slane %v361_v32, 2 }
  0xa1   : > { %v633_v36 = vsel %vm632_vm2, %v620_v34, %v621_v35  ;;  %v400_v37 = vpop.f32.mrf.mxu1  ;;  %v380_v38 = vpop.f32.mrf.mxu0 }
  0xa2   : > { %v635_v39 = vsel %vm634_vm3, %v631_v33, %v633_v36  ;;  %v401_v40 = vadd.f32 %v400_v37, %v219_v23  ;;  %v381_v41 = vadd.f32 %v380_v38, %v219_v23 }
  0xa3   : > { %649 = vst [vmem:[%s924_s27] sm:$0xff] %v635_v39 }
  0xa4   : > { %v622_v42 = vrot.slane %v401_v40, 6  ;;  %v420_v43 = vpop.f32.mrf.mxu2  ;;  %v440_v44 = vpop.f32.mrf.mxu3 }
  0xa5   : > { %v421_v45 = vadd.f32 %v420_v43, %v219_v23  ;;  %v441_v46 = vadd.f32 %v440_v44, %v219_v23 }
  0xa6   : > { %v636_v47 = vsel %vm250_vm0, %v381_v41, %v622_v42 }
  0xa7   : > { %v623_v48 = vrot.slane %v421_v45, 4  ;;  %v624_v49 = vrot.slane %v441_v46, 2 }
  0xa9   : > { %v637_v50 = vsel %vm632_vm2, %v623_v48, %v624_v49  ;;  %v480_v51 = vpop.f32.mrf.mxu1  ;;  %v460_v52 = vpop.f32.mrf.mxu0 }
  0xaa   : > { %v638_v53 = vsel %vm634_vm3, %v636_v47, %v637_v50  ;;  %v481_v54 = vadd.f32 %v480_v51, %v219_v23  ;;  %v461_v55 = vadd.f32 %v460_v52, %v219_v23 }
  0xab   : > { %650 = vst [vmem:[%s924_s27 + $0x8] sm:$0xff] %v638_v53 }
  0xac   : > { %v625_v56 = vrot.slane %v481_v54, 6  ;;  %v500_v57 = vpop.f32.mrf.mxu2  ;;  %v520_v58 = vpop.f32.mrf.mxu3 }
  0xad   : > { %v501_v59 = vadd.f32 %v500_v57, %v219_v23  ;;  %v521_v60 = vadd.f32 %v520_v58, %v219_v23 }
  0xae   : > { %v639_v61 = vsel %vm250_vm0, %v461_v55, %v625_v56 }
  0xaf   : > { %v626_v62 = vrot.slane %v501_v59, 4  ;;  %v627_v63 = vrot.slane %v521_v60, 2 }
  0xb1   : > { %v640_v0 = vsel %vm632_vm2, %v626_v62, %v627_v63  ;;  %v560_v1 = vpop.f32.mrf.mxu1  ;;  %v540_v4 = vpop.f32.mrf.mxu0 }
  0xb2   : > { %v641_v2 = vsel %vm634_vm3, %v639_v61, %v640_v0  ;;  %v561_v3 = vadd.f32 %v560_v1, %v219_v23  ;;  %v541_v8 = vadd.f32 %v540_v4, %v219_v23 }
  0xb3   : > { %651 = vst [vmem:[%s924_s27 + $0x10] sm:$0xff] %v641_v2 }
  0xb4   : > { %v580_v5 = vpop.f32.mrf.mxu2  ;;  %v600_v6 = vpop.f32.mrf.mxu3  ;;  %v628_v7 = vrot.slane %v561_v3, 6 }
  0xb5   : > { %v581_v9 = vadd.f32 %v580_v5, %v219_v23  ;;  %v601_v10 = vadd.f32 %v600_v6, %v219_v23 }
  0xb6   : > { %v642_v13 = vsel %vm250_vm0, %v541_v8, %v628_v7 }
  0xb7   : > { %v629_v11 = vrot.slane %v581_v9, 4  ;;  %v630_v12 = vrot.slane %v601_v10, 2 }
  0xb9   : > { %v643_v14 = vsel %vm632_vm2, %v629_v11, %v630_v12 }
  0xba   : > { %v644_v15 = vsel %vm634_vm3, %v642_v13, %v643_v14 }
  0xbb   : > { %652 = vst [vmem:[%s924_s27 + $0x18] sm:$0xff] %v644_v15 }
  0xbc PF: > { %s13_s14 = sadd.s32 1, %s831_s14   ;;  %s954_s12 = smov %s827_s13 }
  0xbd   : > { %p10_p5 = scmp.ge.s32.totalorder %s13_s14, 4   ;;  %s955_s13 = smov %s957_s15 }
  0xbf   :  { %12 = sbr.rel (!%p10_p5) target bundleno = 2 (0x2), region = 63 }

</bundles_post_ra>
